<compile_context>
chip_gen: v7x
topology: tpu7x:2x2x1
jax: 0.10.0
libtpu: 0.0.40
codegen_flags: <defaults>
</compile_context>

<pallas_src>
import jax
import jax.numpy as jnp
from jax.experimental import pallas as pl
from jax.experimental.pallas import tpu as pltpu


def _round_up(x, m):
    return ((x + m - 1) // m) * m


def _critic_kernel(x_ref, w1_ref, b1_ref, w2_ref, b2_ref, w3_ref, b3_ref, o_ref):
    """Fused 3-layer Q1 MLP for one (tb, K_pad) batch tile.

    x_ref : (tb, K_pad) bf16   packed [obs|prev_lat|prev_act|lat|act] slab
    w1_ref: (K_pad, H1) bf16   (zero rows for the K pad)
    w2_ref: (H1, H2)    bf16
    b1/b2 : (1, H*)     f32
    w3_ref: (1, H2)     f32    scalar-head weights as a row vector
    b3_ref: (1, 1)      f32
    o_ref : (tb, 1)     f32
    """
    # Layer 1: single MXU matmul over the lane-packed input slab
    # (torch.cat is already fused into x by the wrapper's single preprocessing op).
    h1 = jnp.dot(x_ref[...], w1_ref[...], preferred_element_type=jnp.float32)
    h1 = jnp.maximum(h1 + b1_ref[...], 0.0)

    # Layer 2: bf16 MXU operands, f32 accumulation.
    h2 = jnp.dot(h1.astype(jnp.bfloat16), w2_ref[...],
                 preferred_element_type=jnp.float32)
    h2 = jnp.maximum(h2 + b2_ref[...], 0.0)

    # Layer 3 (scalar head): VPU multiply + XLU lane-reduce in f32.  Avoids a
    # 128-lane-padded MXU matmul and a 128x over-wide HBM writeback.
    q = jnp.sum(h2 * w3_ref[...], axis=-1, keepdims=True) + b3_ref[...]
    o_ref[...] = q.astype(o_ref.dtype)


def option_single_q_critic_forward(obs, prev_lat, prev_act, lat, act, params,
                                   use_prev_action=True, batch_tile=2048):
    """Forward of OptionSingleQCritic (use_tanh=False).  Returns q1 of shape (B, 1)."""
    w1, b1, w2, b2, w3, b3 = params

    if use_prev_action:
        pieces = [obs, prev_lat, prev_act, lat, act]
    else:
        pieces = [obs, prev_lat, lat, act]

    B = int(pieces[0].shape[0])
    in_dim = sum(int(p.shape[-1]) for p in pieces)
    h1_dim, h2_dim = int(w1.shape[1]), int(w2.shape[1])
    assert int(w1.shape[0]) == in_dim

    # ---- batch tiling ----------------------------------------------------
    tb = min(batch_tile, _round_up(B, 16))
    tb = _round_up(tb, 16)
    # v7x has 2 TensorCores: when there is enough work, make sure the
    # "parallel" batch axis has at least 2 grid steps so both cores are used.
    if B > 32 and -(-B // tb) < 2:
        tb = _round_up(-(-B // 2), 16)
    B_pad = _round_up(B, tb)
    grid = (B_pad // tb,)

    # ---- fused preprocessing: concat + cast + pad in ONE XLA pass ---------
    # (Batch-tail pad is folded into the same fusion; rows are independent and
    #  the garbage-free zero rows are discarded by the [:B] slice below.)
    K_pad = _round_up(in_dim, 64)        # minimal bf16-friendly pad: 58 -> 64
    x = jnp.concatenate(pieces, axis=-1)
    x = jnp.pad(x, ((0, B_pad - B), (0, K_pad - in_dim))).astype(jnp.bfloat16)

    # Weights: layer-1 padded row-wise to K_pad (zero rows -> no contribution),
    # bf16 MXU operands; scalar head as an f32 row vector for the VPU epilogue.
    w1_bf = jnp.pad(w1, ((0, K_pad - in_dim), (0, 0))).astype(jnp.bfloat16)
    w2_bf = w2.astype(jnp.bfloat16)
    b1_f = b1.reshape(1, h1_dim).astype(jnp.float32)
    b2_f = b2.reshape(1, h2_dim).astype(jnp.float32)
    w3_row = w3.reshape(h2_dim, 1).T.astype(jnp.float32)     # (1, H2)
    b3_f = b3.reshape(1, 1).astype(jnp.float32)

    # Constant index_map -> block index never changes -> weights stay resident
    # in VMEM across grid steps (no re-DMA).
    resident = lambda a: pl.BlockSpec(a.shape, lambda i: (0, 0))
    in_specs = [
        pl.BlockSpec((tb, K_pad), lambda i: (i, 0)),   # packed input tile
        resident(w1_bf), resident(b1_f),
        resident(w2_bf), resident(b2_f),
        resident(w3_row), resident(b3_f),
    ]
    out_spec = pl.BlockSpec((tb, 1), lambda i: (i, 0))

    flops = 2 * B_pad * (K_pad * h1_dim + h1_dim * h2_dim + h2_dim)
    bytes_accessed = (B_pad * K_pad * 2                       # bf16 packed input
                      + (w1_bf.size + w2_bf.size) * 2         # bf16 weights (once)
                      + (b1_f.size + b2_f.size + w3_row.size + b3_f.size) * 4
                      + B_pad * 4)                            # (B_pad, 1) f32 output
    cost = pl.CostEstimate(flops=flops, transcendentals=0,
                           bytes_accessed=int(bytes_accessed))

    q_pad = pl.pallas_call(
        _critic_kernel,
        out_shape=jax.ShapeDtypeStruct((B_pad, 1), jnp.float32),
        grid=grid,
        in_specs=in_specs,
        out_specs=out_spec,
        compiler_params=pltpu.CompilerParams(dimension_semantics=("parallel",)),
        cost_estimate=cost,
    )(x, w1_bf, b1_f, w2_bf, b2_f, w3_row, b3_f)

    return q_pad[:B]


def make_params(key, input_dim, hidden_dims, output_dim=1):
    """Deterministic synthetic init (stands in for weight_init / orthogonal)."""
    dims = [input_dim] + list(hidden_dims) + [output_dim]
    params = []
    for i in range(len(dims) - 1):
        key, kw = jax.random.split(key)
        w = jax.random.normal(kw, (dims[i], dims[i + 1]), jnp.float32) / jnp.sqrt(dims[i])
        b = jnp.zeros((1, dims[i + 1]), jnp.float32)
        params += [w, b]
    return tuple(params)


def reference_forward(obs, prev_lat, prev_act, lat, act, params, use_prev_action=True):
    if use_prev_action:
        x = jnp.concatenate([obs, prev_lat, prev_act, lat, act], axis=-1)
    else:
        x = jnp.concatenate([obs, prev_lat, lat, act], axis=-1)
    x = x.astype(jnp.float32)
    w1, b1, w2, b2, w3, b3 = params
    h1 = jnp.maximum(x @ w1 + b1, 0.0)
    h2 = jnp.maximum(h1 @ w2 + b2, 0.0)
    return h2 @ w3 + b3


if __name__ == "__main__":
    # Shapes consistent with the module:
    #   obs_dim=32, action_dim=8, lat_dim=4, extra_option_dim=1,
    #   extra_action_dim=1, use_prev_action=True, hidden_critic=(256, 256)
    #   input_dim = 32 + (4+1) + (8+1) + 4 + 8 = 58, Q output dim = 1
    batch = 2
    obs_dim, action_dim, lat_dim = 32, 8, 4
    extra_option_dim, extra_action_dim = 1, 1
    hidden_critic = (256, 256)
    input_dim = (obs_dim + (lat_dim + extra_option_dim) + (action_dim + extra_action_dim)
                 + lat_dim + action_dim)

    key = jax.random.PRNGKey(0)
    k_obs, k_plat, k_pact, k_lat, k_act, k_par = jax.random.split(key, 6)
    obs = jax.random.normal(k_obs, (batch, obs_dim), jnp.float32)
    prev_lat = jax.random.normal(k_plat, (batch, lat_dim + extra_option_dim), jnp.float32)
    prev_act = jax.random.normal(k_pact, (batch, action_dim + extra_action_dim), jnp.float32)
    lat = jax.random.normal(k_lat, (batch, lat_dim), jnp.float32)
    act = jax.random.normal(k_act, (batch, action_dim), jnp.float32)

    params = make_params(k_par, input_dim, hidden_critic, 1)

    q1 = option_single_q_critic_forward(obs, prev_lat, prev_act, lat, act, params)
    q1 = jax.block_until_ready(q1)

    ref = reference_forward(obs, prev_lat, prev_act, lat, act, params)
    assert q1.shape == (batch, 1), q1.shape
    # bf16 MXU operands on layers 1-2 -> looser tolerance than pure f32
    # (accumulation and the scalar head are f32).
    assert jnp.allclose(q1, ref, atol=5e-2, rtol=5e-2), (q1, ref)
    print("KERNEL_OK")
</pallas_src>

<mosaic_0001>
module attributes {stable_mosaic.version = 11 : i64} {
  func.func @_critic_kernel(%arg0: i32, %arg1: memref<16x64xbf16, #tpu.memory_space<vmem>>, %arg2: memref<64x256xbf16, #tpu.memory_space<vmem>>, %arg3: memref<1x256xf32, #tpu.memory_space<vmem>>, %arg4: memref<256x256xbf16, #tpu.memory_space<vmem>>, %arg5: memref<1x256xf32, #tpu.memory_space<vmem>>, %arg6: memref<1x256xf32, #tpu.memory_space<vmem>>, %arg7: memref<1x1xf32, #tpu.memory_space<vmem>>, %arg8: memref<16x1xf32, #tpu.memory_space<vmem>>) attributes {dimension_semantics = [#tpu.dimension_semantics<parallel>], iteration_bounds = array<i64: 1>, scalar_prefetch = 0 : i64, scratch_operands = 0 : i64, tpu.core_type = #tpu.core_type<tc>, window_params = [{transform_indices = @transform_0, window_bounds = array<i64: 16, 64>}, {pipeline_mode = #tpu.pipeline_mode<synchronous>, transform_indices = @transform_1, window_bounds = array<i64: 64, 256>}, {pipeline_mode = #tpu.pipeline_mode<synchronous>, transform_indices = @transform_2, window_bounds = array<i64: 1, 256>}, {pipeline_mode = #tpu.pipeline_mode<synchronous>, transform_indices = @transform_3, window_bounds = array<i64: 256, 256>}, {pipeline_mode = #tpu.pipeline_mode<synchronous>, transform_indices = @transform_4, window_bounds = array<i64: 1, 256>}, {pipeline_mode = #tpu.pipeline_mode<synchronous>, transform_indices = @transform_5, window_bounds = array<i64: 1, 256>}, {pipeline_mode = #tpu.pipeline_mode<synchronous>, transform_indices = @transform_6, window_bounds = array<i64: 1, 1>}, {transform_indices = @transform_7, window_bounds = array<i64: 16, 1>}]} {
    %c0 = arith.constant 0 : index
    %c0_0 = arith.constant 0 : index
    %0 = vector.load %arg1[%c0, %c0_0] : memref<16x64xbf16, #tpu.memory_space<vmem>>, vector<16x64xbf16>
    %c0_1 = arith.constant 0 : index
    %c0_2 = arith.constant 0 : index
    %1 = vector.load %arg2[%c0_1, %c0_2] : memref<64x256xbf16, #tpu.memory_space<vmem>>, vector<64x256xbf16>
    %cst = arith.constant dense<0.000000e+00> : vector<16x256xf32>
    %2 = tpu.matmul %0, %1, %cst {dimension_numbers = #tpu.dot_dimension_numbers<[1], [0], [0], [1], [0, 0, 1, 1], [], []>} : vector<16x64xbf16>, vector<64x256xbf16>, vector<16x256xf32> -> vector<16x256xf32>
    %c0_3 = arith.constant 0 : index
    %c0_4 = arith.constant 0 : index
    %3 = vector.load %arg3[%c0_3, %c0_4] : memref<1x256xf32, #tpu.memory_space<vmem>>, vector<1x256xf32>
    %4 = vector.broadcast %3 : vector<1x256xf32> to vector<16x256xf32>
    %5 = arith.addf %2, %4 : vector<16x256xf32>
    %cst_5 = arith.constant 0.000000e+00 : f32
    %6 = vector.broadcast %cst_5 : f32 to vector<16x256xf32>
    %7 = arith.maximumf %5, %6 : vector<16x256xf32>
    %8 = arith.truncf %7 : vector<16x256xf32> to vector<16x256xbf16>
    %c0_6 = arith.constant 0 : index
    %c0_7 = arith.constant 0 : index
    %9 = vector.load %arg4[%c0_6, %c0_7] : memref<256x256xbf16, #tpu.memory_space<vmem>>, vector<256x256xbf16>
    %cst_8 = arith.constant dense<0.000000e+00> : vector<16x256xf32>
    %10 = tpu.matmul %8, %9, %cst_8 {dimension_numbers = #tpu.dot_dimension_numbers<[1], [0], [0], [1], [0, 0, 1, 1], [], []>} : vector<16x256xbf16>, vector<256x256xbf16>, vector<16x256xf32> -> vector<16x256xf32>
    %c0_9 = arith.constant 0 : index
    %c0_10 = arith.constant 0 : index
    %11 = vector.load %arg5[%c0_9, %c0_10] : memref<1x256xf32, #tpu.memory_space<vmem>>, vector<1x256xf32>
    %12 = vector.broadcast %11 : vector<1x256xf32> to vector<16x256xf32>
    %13 = arith.addf %10, %12 : vector<16x256xf32>
    %cst_11 = arith.constant 0.000000e+00 : f32
    %14 = vector.broadcast %cst_11 : f32 to vector<16x256xf32>
    %15 = arith.maximumf %13, %14 : vector<16x256xf32>
    %c0_12 = arith.constant 0 : index
    %c0_13 = arith.constant 0 : index
    %16 = vector.load %arg6[%c0_12, %c0_13] : memref<1x256xf32, #tpu.memory_space<vmem>>, vector<1x256xf32>
    %17 = vector.broadcast %16 : vector<1x256xf32> to vector<16x256xf32>
    %18 = arith.mulf %15, %17 : vector<16x256xf32>
    %cst_14 = arith.constant dense<0.000000e+00> : vector<16xf32>
    %19 = vector.multi_reduction <add>, %18, %cst_14 [1] : vector<16x256xf32> to vector<16xf32>
    %20 = vector.shape_cast %19 : vector<16xf32> to vector<16x1xf32>
    %c0_15 = arith.constant 0 : index
    %c0_16 = arith.constant 0 : index
    %21 = vector.load %arg7[%c0_15, %c0_16] : memref<1x1xf32, #tpu.memory_space<vmem>>, vector<1x1xf32>
    %22 = vector.broadcast %21 : vector<1x1xf32> to vector<16x1xf32>
    %23 = arith.addf %20, %22 : vector<16x1xf32>
    %c0_17 = arith.constant 0 : index
    %c0_18 = arith.constant 0 : index
    %24 = vector.load %arg8[%c0_17, %c0_18] : memref<16x1xf32, #tpu.memory_space<vmem>>, vector<16x1xf32>
    tpu.vector_store %arg8[%c0_17, %c0_18], %23 {strides = array<i32>} : memref<16x1xf32, #tpu.memory_space<vmem>>, vector<16x1xf32>,
    return
  }
  func.func @transform_0(%arg0: i32) -> (i32, i32) {
    %c0_i32 = arith.constant 0 : i32
    %c0_i32_0 = arith.constant 0 : i32
    return %arg0, %c0_i32 : i32, i32
  }
  func.func @transform_1(%arg0: i32) -> (i32, i32) {
    %c0_i32 = arith.constant 0 : i32
    %c0_i32_0 = arith.constant 0 : i32
    %c0_i32_1 = arith.constant 0 : i32
    return %c0_i32, %c0_i32_0 : i32, i32
  }
  func.func @transform_2(%arg0: i32) -> (i32, i32) {
    %c0_i32 = arith.constant 0 : i32
    %c0_i32_0 = arith.constant 0 : i32
    %c0_i32_1 = arith.constant 0 : i32
    return %c0_i32, %c0_i32_0 : i32, i32
  }
  func.func @transform_3(%arg0: i32) -> (i32, i32) {
    %c0_i32 = arith.constant 0 : i32
    %c0_i32_0 = arith.constant 0 : i32
    %c0_i32_1 = arith.constant 0 : i32
    return %c0_i32, %c0_i32_0 : i32, i32
  }
  func.func @transform_4(%arg0: i32) -> (i32, i32) {
    %c0_i32 = arith.constant 0 : i32
    %c0_i32_0 = arith.constant 0 : i32
    %c0_i32_1 = arith.constant 0 : i32
    return %c0_i32, %c0_i32_0 : i32, i32
  }
  func.func @transform_5(%arg0: i32) -> (i32, i32) {
    %c0_i32 = arith.constant 0 : i32
    %c0_i32_0 = arith.constant 0 : i32
    %c0_i32_1 = arith.constant 0 : i32
    return %c0_i32, %c0_i32_0 : i32, i32
  }
  func.func @transform_6(%arg0: i32) -> (i32, i32) {
    %c0_i32 = arith.constant 0 : i32
    %c0_i32_0 = arith.constant 0 : i32
    %c0_i32_1 = arith.constant 0 : i32
    return %c0_i32, %c0_i32_0 : i32, i32
  }
  func.func @transform_7(%arg0: i32) -> (i32, i32) {
    %c0_i32 = arith.constant 0 : i32
    %c0_i32_0 = arith.constant 0 : i32
    return %arg0, %c0_i32 : i32, i32
  }
}

</mosaic_0001>

<bundles_post_ra>
// kernel: tpu_custom_call.1
= control target key start
LH: loop header
LB: loop body
LE: loop exit
PB: predicated region body
PF: predicated region fallthrough
CT: control target
= control target key end

     0   :  { %s771_s0 = inlined_call_operand.hbm [shape: bf16[16,64], index: 0, kind: input, shape index: {}]   ;;  %s772_s1 = inlined_call_operand.hbm [shape: bf16[64,256], index: 1, kind: input, shape index: {}]   ;;  %s773_s2 = inlined_call_operand.vmem [shape: f32[1,256], index: 2, kind: input, shape index: {}]   ;;  %s774_s3 = inlined_call_operand.hbm [shape: bf16[256,256], index: 3, kind: input, shape index: {}]   ;;  %s775_s4 = inlined_call_operand.vmem [shape: f32[1,256], index: 4, kind: input, shape index: {}]   ;;  %s776_s5 = inlined_call_operand.vmem [shape: f32[1,256], index: 5, kind: input, shape index: {}]   ;;  %s777_s6 = inlined_call_operand.<no memory space> [shape: f32[1,1], index: 6, kind: input, shape index: {}]   ;;  %s778_s7 = inlined_call_operand.vmem [shape: f32[16,1], index: 7, kind: output, shape index: {}]  }
   0x1   :  { %v12_v0 = vstv %s777_s6 }
   0x2   :  { %13 = vst [vmem:[#allocation2] sm:$0x1] %v12_v0 }
   0x3   :  { %14 = vsyncpa [#allocation4], 0 }
   0x4   :  { %15 = vsyncpa [#allocation6], 0  ;;  %s663_s26 = smov [#allocation5]   ;;  %s593_s30 = scalar_lea.hbm %s772_s1, 1024 }
   0x5   :  { %s33_s27 = sshll.u32 %s663_s26, 4  ;;  %p594_p0 = scmp.ne.s32.totalorder %s772_s1, %s593_s30  ;;  %s34_s27 = int_to_ptr.vmem [resolvable:$true] %s33_s27 }
   0x6   :  { %p597_p1 = scmp.lt.u32.totalorder %s593_s30, %s772_s1 }
   0x8   :  { %p599_p2 = pnand %p597_p1, %p594_p0 }
   0xa   :  { %602 = shalt.err (!%p599_p2)
}
   0xb   :  { %s603_s6 = scalar_lea.vmem %s34_s27, 1024  ;;  %p608_p4 = scmp.lt.s32.totalorder %s34_s27, %s34_s27 }
   0xc   :  { %p604_p3 = scmp.ne.s32.totalorder %s34_s27, %s603_s6  ;;  %p609_p5 = scmp.lt.s32.totalorder %s603_s6, %s603_s6 }
   0xe   :  { %p610_p6 = por %p609_p5, %p608_p4 }
  0x10   :  { %p611_p7 = pnand %p610_p6, %p604_p3 }
  0x12   :  { %614 = shalt.err (!%p611_p7)
}
  0x13   :  { %s664_s12 = smov 128   ;;  %s665_s13 = smov 8  }
  0x14   :  { %39 = dma.hbm_to_vmem [thread:$0]  %s772_s1, 1024, %s34_s27, [#allocation6], %s664_s12, %s664_s12, %s665_s13  }
  0x15   :  { %s666_s16 = smov [#allocation3]   ;;  %s615_s20 = scalar_lea.hbm %s771_s0, 128 }
  0x16   :  { %s21_s17 = sshll.u32 %s666_s16, 4  ;;  %p616_p8 = scmp.ne.s32.totalorder %s771_s0, %s615_s20  ;;  %s22_s17 = int_to_ptr.vmem [resolvable:$true] %s21_s17 }
  0x17   :  { %p619_p9 = scmp.lt.u32.totalorder %s615_s20, %s771_s0 }
  0x19   :  { %p621_p10 = pnand %p619_p9, %p616_p8 }
  0x1b   :  { %624 = shalt.err (!%p621_p10)
}
  0x1c   :  { %s625_s25 = scalar_lea.vmem %s22_s17, 128  ;;  %p630_p12 = scmp.lt.s32.totalorder %s22_s17, %s22_s17 }
  0x1d   :  { %p626_p11 = scmp.ne.s32.totalorder %s22_s17, %s625_s25  ;;  %p631_p13 = scmp.lt.s32.totalorder %s625_s25, %s625_s25 }
  0x1f   :  { %p632_p0 = por %p631_p13, %p630_p12 }
  0x21   :  { %p633_p1 = pnand %p632_p0, %p626_p11 }
  0x23   :  { %636 = shalt.err (!%p633_p1)
}
  0x24   :  { %s667_s1 = smov 64   ;;  %s668_s26 = smov 4  }
  0x25   :  { %27 = dma.hbm_to_vmem [thread:$0]  %s771_s0, 128, %s22_s17, [#allocation4], %s667_s1, %s667_s1, %s668_s26  }
  0x26   :  { %s669_s29 = smov [#allocation7]   ;;  %s637_s10 = scalar_lea.hbm %s774_s3, 4096 }
  0x27   :  { %s47_s30 = sshll.u32 %s669_s29, 4  ;;  %p638_p2 = scmp.ne.s32.totalorder %s774_s3, %s637_s10  ;;  %s48_s30 = int_to_ptr.vmem [resolvable:$true] %s47_s30 }
  0x28   :  { %p641_p3 = scmp.lt.u32.totalorder %s637_s10, %s774_s3 }
  0x2a   :  { %p643_p4 = pnand %p641_p3, %p638_p2 }
  0x2c   :  { %646 = shalt.err (!%p643_p4)
}
  0x2d   :  { %s647_s16 = scalar_lea.vmem %s48_s30, 4096  ;;  %p652_p6 = scmp.lt.s32.totalorder %s48_s30, %s48_s30 }
  0x2e   :  { %p648_p5 = scmp.ne.s32.totalorder %s48_s30, %s647_s16  ;;  %p653_p7 = scmp.lt.s32.totalorder %s647_s16, %s647_s16 }
  0x30   :  { %p654_p8 = por %p653_p7, %p652_p6 }
  0x32   :  { %p655_p9 = pnand %p654_p8, %p648_p5 }
  0x34   :  { %658 = shalt.err (!%p655_p9)
}
  0x35   :  { %53 = dma.hbm_to_vmem [thread:$0]  %s774_s3, 4096, %s48_s30, [#allocation6], %s664_s12, %s664_s12, %s665_s13  }
  0x36   :  { %659 = dma.done.wait [#allocation4], 128  }
  0x37   :  { %660 = vsyncadd [#allocation4], 4294967168 }
  0x38   :  { %661 = dma.done.wait [#allocation6], 5120  }
  0x39   :  { %662 = vsyncadd [#allocation6], 4294962176  ;;  %v670_v1 = vmov 0   ;;  %v532_v2 = vld [vmem:[#allocation5 + $0x4] ss:$8 sps:$4 sm:$0xff]   ;;  %v544_v15 = vld [vmem:[#allocation3] sm:$0xff]   ;;  %v82_v43 = vlaneseq }
  0x3a   :  { %173 = vmatprep.mubr.bf16.mxu0 %v670_v1  ;;  %v534_v3 = vld [vmem:[#allocation5] ss:$8 sps:$4 sm:$0xff]   ;;  %141 = vmatprep.subr.bf16.mxu0 %v532_v2  ;;  %v535_v4 = vld [vmem:[#allocation5 + $0x14] ss:$8 sps:$4 sm:$0xff]   ;;  %v537_v5 = vld [vmem:[#allocation5 + $0x10] ss:$8 sps:$4 sm:$0xff]  }
  0x3b   :  { %142 = vmatpush1.bf16.msra.mxu0 %v534_v3  ;;  %v538_v6 = vld [vmem:[#allocation5 + $0x24] ss:$8 sps:$4 sm:$0xff]   ;;  %v540_v7 = vld [vmem:[#allocation5 + $0x20] ss:$8 sps:$4 sm:$0xff]   ;;  %v541_v10 = vld [vmem:[#allocation5 + $0x34] ss:$8 sps:$4 sm:$0xff]  }
  0x3c   :  { %143 = vmatprep.subr.bf16.mxu0 %v535_v4  ;;  %v545_v8 = vld [vmem:[#allocation7 + $0x4] ss:$8 sps:$4 sm:$0xff]   ;;  %v547_v9 = vld [vmem:[#allocation7] ss:$8 sps:$4 sm:$0xff]   ;;  %v548_v11 = vld [vmem:[#allocation7 + $0x14] ss:$8 sps:$4 sm:$0xff]  }
  0x3d   :  { %394 = vmatprep.subr.bf16.mxu1 %v545_v8  ;;  %v550_v12 = vld [vmem:[#allocation7 + $0x10] ss:$8 sps:$4 sm:$0xff]   ;;  %v551_v14 = vld [vmem:[#allocation7 + $0x24] ss:$8 sps:$4 sm:$0xff]   ;;  %v553_v16 = vld [vmem:[#allocation7 + $0x20] ss:$8 sps:$4 sm:$0xff]  }
  0x3e   :  { %395 = vmatpush1.bf16.msra.mxu1 %v547_v9  ;;  %v543_v13 = vld [vmem:[#allocation5 + $0x30] ss:$8 sps:$4 sm:$0xff]   ;;  %vm137_vm0 = vcmask 523264   ;;  %v554_v17 = vld [vmem:[#allocation7 + $0x34] ss:$8 sps:$4 sm:$0xff]   ;;  %v83_v44 = vshrl.u32 %v82_v43, 7 }
  0x3f   :  { %144 = vmatpush1.bf16.msra.mxu0 %v537_v5  ;;  %396 = vmatprep.subr.bf16.mxu1 %v548_v11  ;;  %v556_v18 = vld [vmem:[#allocation7 + $0x30] ss:$8 sps:$4 sm:$0xff]   ;;  %v557_v19 = vld [vmem:[#allocation7 + $0x44] ss:$8 sps:$4 sm:$0xff]   ;;  %v559_v20 = vld [vmem:[#allocation7 + $0x40] ss:$8 sps:$4 sm:$0xff]  }
  0x40   :  { %145 = vmatprep.subr.bf16.mxu0 %v538_v6  ;;  %v560_v21 = vld [vmem:[#allocation7 + $0x54] ss:$8 sps:$4 sm:$0xff]   ;;  %v562_v22 = vld [vmem:[#allocation7 + $0x50] ss:$8 sps:$4 sm:$0xff]   ;;  %v563_v23 = vld [vmem:[#allocation7 + $0x64] ss:$8 sps:$4 sm:$0xff]  }
  0x41   :  { %v565_v24 = vld [vmem:[#allocation7 + $0x60] ss:$8 sps:$4 sm:$0xff]   ;;  %v566_v25 = vld [vmem:[#allocation7 + $0x74] ss:$8 sps:$4 sm:$0xff]   ;;  %v568_v26 = vld [vmem:[#allocation7 + $0x70] ss:$8 sps:$4 sm:$0xff]  }
  0x42   :  { %397 = vmatpush1.bf16.msra.mxu1 %v550_v12  ;;  %v569_v27 = vld [vmem:[#allocation7 + $0x84] ss:$8 sps:$4 sm:$0xff]   ;;  %v571_v28 = vld [vmem:[#allocation7 + $0x80] ss:$8 sps:$4 sm:$0xff]   ;;  %v572_v29 = vld [vmem:[#allocation7 + $0x94] ss:$8 sps:$4 sm:$0xff]  }
  0x43   :  { %146 = vmatpush1.bf16.msra.mxu0 %v540_v7  ;;  %398 = vmatprep.subr.bf16.mxu1 %v551_v14  ;;  %v574_v30 = vld [vmem:[#allocation7 + $0x90] ss:$8 sps:$4 sm:$0xff]   ;;  %v575_v31 = vld [vmem:[#allocation7 + $0xa4] ss:$8 sps:$4 sm:$0xff]   ;;  %v577_v32 = vld [vmem:[#allocation7 + $0xa0] ss:$8 sps:$4 sm:$0xff]  }
  0x44   :  { %147 = vmatprep.subr.bf16.mxu0 %v541_v10  ;;  %v578_v33 = vld [vmem:[#allocation7 + $0xb4] ss:$8 sps:$4 sm:$0xff]   ;;  %v580_v34 = vld [vmem:[#allocation7 + $0xb0] ss:$8 sps:$4 sm:$0xff]   ;;  %v581_v35 = vld [vmem:[#allocation7 + $0xc4] ss:$8 sps:$4 sm:$0xff]  }
  0x45   :  { %v583_v36 = vld [vmem:[#allocation7 + $0xc0] ss:$8 sps:$4 sm:$0xff]   ;;  %v584_v37 = vld [vmem:[#allocation7 + $0xd4] ss:$8 sps:$4 sm:$0xff]   ;;  %v586_v38 = vld [vmem:[#allocation7 + $0xd0] ss:$8 sps:$4 sm:$0xff]  }
  0x46   :  { %399 = vmatpush1.bf16.msra.mxu1 %v553_v16  ;;  %v587_v39 = vld [vmem:[#allocation7 + $0xe4] ss:$8 sps:$4 sm:$0xff]   ;;  %v589_v40 = vld [vmem:[#allocation7 + $0xe0] ss:$8 sps:$4 sm:$0xff]   ;;  %v590_v41 = vld [vmem:[#allocation7 + $0xf4] ss:$8 sps:$4 sm:$0xff]  }
  0x47   :  { %148 = vmatpush1.bf16.msra.mxu0 %v543_v13  ;;  %400 = vmatprep.subr.bf16.mxu1 %v554_v17  ;;  %v592_v42 = vld [vmem:[#allocation7 + $0xf0] ss:$8 sps:$4 sm:$0xff]   ;;  %v84_v45 = vsub.s32 0, %v83_v44  ;;  %v88_v47 = vsub.s32 1, %v83_v44  ;;  %vm472_vm1 = vcmask 7168  }
  0x48   :  { %v80_v46 = vld [vmem:[%s773_s2] sm:$0x3] }
  0x49   :  { %v85_v48 = vrot.slane %v80_v46, %v84_v45  ;;  %v89_v49 = vrot.slane %v80_v46, %v88_v47  ;;  %v222_v0 = vld [vmem:[%s775_s4] sm:$0x3] }
  0x4a   :  { %490 = vmatmul.mubr.msk.bf16.vlgmr.msra.gmra.mrb[0].mxu0 %vm137_vm0, %v544_v15  ;;  %401 = vmatpush1.bf16.msra.mxu1 %v556_v18  ;;  %v227_v1 = vrot.slane %v222_v0, %v84_v45  ;;  %v231_v2 = vrot.slane %v222_v0, %v88_v47  ;;  %v441_v3 = vld [vmem:[%s776_s5] sm:$0x3] }
  0x4b   :  { %402 = vmatprep.subr.bf16.mxu1 %v557_v19  ;;  %v446_v7 = vrot.slane %v441_v3, %v84_v45  ;;  %v450_v10 = vrot.slane %v441_v3, %v88_v47 }
  0x4e   :  { %403 = vmatpush1.bf16.msra.mxu1 %v559_v20 }
  0x4f   :  { %404 = vmatprep.subr.bf16.mxu1 %v560_v21 }
  0x52   :  { %405 = vmatpush1.bf16.msra.mxu1 %v562_v22 }
  0x53   :  { %406 = vmatprep.subr.bf16.mxu1 %v563_v23 }
  0x56   :  { %407 = vmatpush1.bf16.msra.mxu1 %v565_v24  ;;  %v523_v24 = vld [vmem:[#allocation2] ss:$0 sm:$0xff] }
  0x57   :  { %408 = vmatprep.subr.bf16.mxu1 %v566_v25 }
  0x5a   :  { %409 = vmatpush1.bf16.msra.mxu1 %v568_v26 }
  0x5b   :  { %410 = vmatprep.subr.bf16.mxu1 %v569_v27 }
  0x5e   :  { %411 = vmatpush1.bf16.msra.mxu1 %v571_v28 }
  0x5f   :  { %412 = vmatprep.subr.bf16.mxu1 %v572_v29 }
  0x62   :  { %413 = vmatpush1.bf16.msra.mxu1 %v574_v30 }
  0x63   :  { %414 = vmatprep.subr.bf16.mxu1 %v575_v31 }
  0x66   :  { %415 = vmatpush1.bf16.msra.mxu1 %v577_v32 }
  0x67   :  { %416 = vmatprep.subr.bf16.mxu1 %v578_v33 }
  0x6a   :  { %417 = vmatpush1.bf16.msra.mxu1 %v580_v34 }
  0x6b   :  { %418 = vmatprep.subr.bf16.mxu1 %v581_v35 }
  0x6e   :  { %419 = vmatpush1.bf16.msra.mxu1 %v583_v36 }
  0x6f   :  { %420 = vmatprep.subr.bf16.mxu1 %v584_v37 }
  0x72   :  { %421 = vmatpush1.bf16.msra.mxu1 %v586_v38 }
  0x73   :  { %422 = vmatprep.subr.bf16.mxu1 %v587_v39 }
  0x76   :  { %423 = vmatpush1.bf16.msra.mxu1 %v589_v40 }
  0x77   :  { %424 = vmatprep.subr.bf16.mxu1 %v590_v41 }
  0x7a   :  { %425 = vmatpush1.bf16.msra.mxu1 %v592_v42 }
 0x11d   :  { %v175_v50 = vpop.f32.mrb[0].mxu0 }
 0x11e   :  { %v176_v51 = vadd.f32 %v175_v50, %v85_v48  ;;  %v177_v52 = vpop.f32.mrb[1].mxu0 }
 0x11f   :  { %v178_v53 = vadd.f32 %v177_v52, %v89_v49  ;;  %v179_v54 = vpop.f32.mrb[2].mxu0 }
 0x120   :  { %v180_v55 = vadd.f32 %v179_v54, %v85_v48  ;;  %v181_v56 = vpop.f32.mrb[3].mxu0  ;;  %v184_v58 = vmax.f32 %v176_v51, 0.0 }
 0x121   :  { %v182_v57 = vadd.f32 %v181_v56, %v89_v49  ;;  %v185_v60 = vmax.f32 %v178_v53, 0.0 }
 0x122   :  { %v186_v59 = vmax.f32 %v180_v55, 0.0 }
 0x123   :  { %v187_v61 = vmax.f32 %v182_v57, 0.0 }
 0x124   :  { %v188_v62 = vpack.c.bf16 %v186_v59, %v184_v58 }
 0x125   :  { %v189_v63 = vpack.c.bf16 %v187_v61, %v185_v60 }
 0x127   :  { %426 = vmatprep.mubr.bf16.mxu1 %v189_v63 }
 0x128   :  { %427 = vmatmul.mubr.bf16.vlgmr.msra.gmra.mrb[0].mxu1 %v188_v62 }
 0x1fb   :  { %v428_v4 = vpop.f32.mrb[0].mxu1 }
 0x1fc   :  { %v429_v5 = vadd.f32 %v428_v4, %v227_v1  ;;  %v430_v6 = vpop.f32.mrb[1].mxu1 }
 0x1fd   :  { %v431_v8 = vadd.f32 %v430_v6, %v231_v2  ;;  %v432_v9 = vpop.f32.mrb[2].mxu1 }
 0x1fe   :  { %v437_v11 = vmax.f32 %v429_v5, 0.0  ;;  %v433_v12 = vadd.f32 %v432_v9, %v227_v1  ;;  %v434_v13 = vpop.f32.mrb[3].mxu1 }
 0x1ff   :  { %v438_v14 = vmax.f32 %v431_v8, 0.0  ;;  %v435_v15 = vadd.f32 %v434_v13, %v231_v2 }
 0x200   :  { %v439_v16 = vmax.f32 %v433_v12, 0.0  ;;  %v453_v17 = vmul.f32 %v446_v7, %v437_v11 }
 0x201   :  { %v440_v18 = vmax.f32 %v435_v15, 0.0  ;;  %v454_v19 = vmul.f32 %v450_v10, %v438_v14 }
 0x202   :  { %v455_v20 = vmul.f32 %v446_v7, %v439_v16 }
 0x203   :  { %v456_v21 = vmul.f32 %v450_v10, %v440_v18  ;;  %v457_v22 = vadd.f32 %v454_v19, %v453_v17 }
 0x205   :  { %458 = vadd.xlane.f32.xlu0 %v457_v22  ;;  %v460_v23 = vadd.f32 %v456_v21, %v455_v20 }
 0x209   :  { %461 = vadd.xlane.f32.xlu0 %v460_v23 }
 0x292   :  { %v459_v25 = vpop.xlane.xlu0 %458 }
 0x293   :  { %v470_v26 = vadd.f32 %v523_v24, %v459_v25 }
 0x295   :  { %473 = vst.msk [vmem:[%s778_s7] sm:$0xff] %vm472_vm1, %v470_v26 }
 0x296   :  { %v462_v27 = vpop.xlane.xlu0 %461 }
 0x297   :  { %v471_v28 = vadd.f32 %v523_v24, %v462_v27 }
 0x299   :  { %474 = vst.msk [vmem:[%s778_s7 + $0x8] sm:$0xff] %vm472_vm1, %v471_v28 }
 0x29a   :  { %479 = vsyncpa [#allocation4], 1 }
 0x29b   :  { %480 = vsyncpa [#allocation6], 1 }

</bundles_post_ra>
